<compile_context>
chip_gen: v7x
topology: tpu7x:2x2x1
jax: 0.10.0
libtpu: 0.0.40
codegen_flags: <defaults>
</compile_context>

<pallas_src>
import jax
import jax.numpy as jnp
from jax import lax
from jax.experimental import pallas as pl
from jax.experimental.pallas import tpu as pltpu


def _round_up(x, m):
    return ((x + m - 1) // m) * m


def _make_gather_pool_kernel(tb, s, hp):
    """Kernel: per grid step, pool `tb` batch rows (s tokens each) from a VMEM-resident table.

    ids_ref : SMEM (Bp*s,) int32  — gather indices; masked / padded tokens point at an
                                    all-zero table row, so a plain sum == masked sum.
    t_ref   : VMEM (Vp, hp) f32   — pre-fused tanh(E @ W + b), resident across the grid.
    o_ref   : VMEM (1, tb, hp) f32 — per-row pooled sums (unnormalized), lane-dense.
    """

    def kernel(ids_ref, t_ref, o_ref):
        bi = pl.program_id(0)
        tile_base = bi * (tb * s)

        def pool_row(r):
            row_base = tile_base + r * s
            acc = jnp.zeros((1, hp), jnp.float32)
            if s <= 32:
                # Short fixed trip-count: static unroll (keeps the LLO scheduler happy).
                for si in range(s):
                    tok = ids_ref[row_base + si]
                    acc = acc + t_ref[pl.ds(tok, 1), :]
            else:
                def body(si, a):
                    tok = ids_ref[row_base + si]
                    return a + t_ref[pl.ds(tok, 1), :]
                acc = lax.fori_loop(0, s, body, acc)
            o_ref[0, pl.ds(r, 1), :] = acc

        if tb <= 8:
            for r in range(tb):          # tiny tiles: static unroll
                pool_row(r)
        else:
            pl.loop(0, tb)(pool_row)     # big tiles: in-kernel scf.for

    return kernel


def _pool_pregathered_kernel(x_ref, o_ref):
    # x_ref: (TB, S, Hp) bf16 rows of the pre-fused table (masked tokens already zero rows).
    o_ref[0] = jnp.sum(x_ref[...].astype(jnp.float32), axis=1)


def imodel_forward(input_ids, attention_mask, embed_table, W, b):
    """input_ids: (B, S) int32, attention_mask: (B, S) {0,1}. Returns (B, H) f32."""
    B, S = input_ids.shape
    V, H = embed_table.shape

    # Lane-dense hidden dim (multiple of 128); vocab padded so an all-zero "null" row exists.
    Hp = max(128, _round_up(H, 128))
    null_row = V
    Vp = _round_up(V + 1, 8)

    # ---- parameter pre-fusion (do once; cache across calls in real use) ----
    # tanh(E[ids] @ W + b) == tanh(E @ W + b)[ids]  (row-wise pointwise), so the per-call
    # hot path needs no matmul and no tanh at all, and keeps full f32 precision.
    T = jnp.tanh(embed_table.astype(jnp.float32) @ W.astype(jnp.float32)
                 + b.astype(jnp.float32)[None, :])                       # (V, H) f32
    T_p = jnp.zeros((Vp, Hp), jnp.float32).at[:V, :H].set(T)             # rows V.. are zero

    # ---- fold the attention mask into the gather indices; keep 1/len as a post-scale ----
    ids_eff = jnp.where(attention_mask > 0, input_ids, null_row).astype(jnp.int32)
    inv_len = 1.0 / jnp.maximum(jnp.sum(attention_mask.astype(jnp.float32), axis=1), 1.0)

    # ---- per-generation VMEM budget (v5e/v6e: 128 MiB, v7x: 64 MiB physical) ----
    try:
        vmem_cap = int(pltpu.get_tpu_info().vmem_capacity_bytes)
    except Exception:
        vmem_cap = 64 * 1024 * 1024
    vmem_limit = int(vmem_cap * 0.75)            # ~25% headroom for compiler temporaries

    table_vmem = 2 * Vp * Hp * 4                 # resident table (conservatively 2 buffers)
    ids_smem_ok = (B * S * 4) <= 256 * 1024      # flattened ids must fit SMEM comfortably
    use_resident = (table_vmem <= int(vmem_limit * 0.6)) and ids_smem_ok

    if use_resident:
        # --- fused path: in-kernel gather from a VMEM-resident pre-fused table ---
        tokens_target = 2048                     # mem-bound regime: big tiles amortize ~0.35us/step
        tb = max(1, tokens_target // max(S, 1))
        tb = min(tb, max(B, 1))
        if B >= 2:
            tb = min(tb, pl.cdiv(B, 2))          # keep >= 2 grid steps (v7x: 2 TensorCores)
        out_budget = vmem_limit - table_vmem - (2 << 20)
        tb = max(1, min(tb, out_budget // (2 * Hp * 4)))
        nb = pl.cdiv(B, tb)
        if nb > 1 and nb % 2 == 1:
            nb += 1                              # even step count -> both v7x cores get equal work
        Bp = nb * tb

        ids_flat = ids_eff.reshape(-1)
        if Bp != B:
            ids_flat = jnp.concatenate(
                [ids_flat, jnp.full(((Bp - B) * S,), null_row, jnp.int32)])

        out = pl.pallas_call(
            _make_gather_pool_kernel(tb, S, Hp),
            out_shape=jax.ShapeDtypeStruct((nb, tb, Hp), jnp.float32),
            grid_spec=pltpu.PrefetchScalarGridSpec(
                num_scalar_prefetch=1,           # flattened ids -> SMEM
                grid=(nb,),
                in_specs=[
                    # Pre-fused table: constant index_map -> resident across the grid.
                    pl.BlockSpec((Vp, Hp), lambda bi, ids: (0, 0)),
                ],
                out_specs=pl.BlockSpec((1, tb, Hp), lambda bi, ids: (bi, 0, 0)),
            ),
            compiler_params=pltpu.CompilerParams(
                dimension_semantics=("parallel",),
                vmem_limit_bytes=vmem_limit,
            ),
            cost_estimate=pl.CostEstimate(
                flops=2 * Bp * S * Hp,
                transcendentals=0,
                bytes_accessed=Vp * Hp * 4 + Bp * S * 4 + Bp * Hp * 4,
            ),
        )(ids_flat, T_p)
        pooled = out.reshape(Bp, Hp)[:B, :H]
    else:
        # --- fallback: table too large for VMEM (or ids too long for SMEM) ---
        # Gather rows of the pre-fused table on the XLA side (bf16 halves HBM traffic) and
        # only do the pooling reduce in-kernel.
        # TODO(synk): in-kernel DMA row-gather (pl.ANY table + make_async_copy) for huge vocabs.
        tokens_target = 2048
        tb = max(1, tokens_target // max(S, 1))
        tb = min(tb, max(B, 1))
        if B >= 2:
            tb = min(tb, pl.cdiv(B, 2))
        per_row = 2 * S * Hp * 2 + 2 * Hp * 4    # 2x bf16 x-block + 2x f32 out block, per row
        tb = max(1, min(tb, (vmem_limit - (2 << 20)) // per_row))
        nb = pl.cdiv(B, tb)
        if nb > 1 and nb % 2 == 1:
            nb += 1
        Bp = nb * tb

        ids_p = ids_eff
        if Bp != B:
            ids_p = jnp.concatenate(
                [ids_eff, jnp.full((Bp - B, S), null_row, jnp.int32)], axis=0)
        x = jnp.take(T_p.astype(jnp.bfloat16), ids_p, axis=0)           # (Bp, S, Hp) bf16

        out = pl.pallas_call(
            _pool_pregathered_kernel,
            out_shape=jax.ShapeDtypeStruct((nb, tb, Hp), jnp.float32),
            grid_spec=pltpu.PrefetchScalarGridSpec(
                num_scalar_prefetch=0,
                grid=(nb,),
                in_specs=[pl.BlockSpec((tb, S, Hp), lambda bi: (bi, 0, 0))],
                out_specs=pl.BlockSpec((1, tb, Hp), lambda bi: (bi, 0, 0)),
            ),
            compiler_params=pltpu.CompilerParams(
                dimension_semantics=("parallel",),
                vmem_limit_bytes=vmem_limit,
            ),
            cost_estimate=pl.CostEstimate(
                flops=Bp * S * Hp,
                transcendentals=0,
                bytes_accessed=Bp * S * Hp * 2 + Bp * Hp * 4,
            ),
        )(x)
        pooled = out.reshape(Bp, Hp)[:B, :H]

    # Mean-pool normalization (tiny O(B*H) elementwise op, fused by XLA with the slice).
    return pooled * inv_len[:, None]


def _reference(input_ids, attention_mask, embed_table, W, b):
    x = jnp.take(embed_table, input_ids, axis=0).astype(jnp.float32)
    m = attention_mask.astype(jnp.float32)[..., None]
    h = jnp.tanh(x @ W + b[None, None, :])
    num = jnp.sum(h * m, axis=1)
    den = jnp.maximum(jnp.sum(m, axis=1), 1.0)
    return num / den


if __name__ == "__main__":
    B, S, H, V = 2, 8, 32, 64

    key = jax.random.PRNGKey(0)
    k_emb, k_w, k_b, k_ids = jax.random.split(key, 4)

    # Deterministic synthetic parameters (shapes implied by the forward interface).
    embed_table = jax.random.normal(k_emb, (V, H), dtype=jnp.float32) * 0.02
    W = jax.random.normal(k_w, (H, H), dtype=jnp.float32) * 0.1
    b = jax.random.normal(k_b, (H,), dtype=jnp.float32) * 0.01

    input_ids = jax.random.randint(k_ids, (B, S), 0, V, dtype=jnp.int32)
    attention_mask = jnp.array(
        [[1, 1, 1, 1, 1, 1, 0, 0],
         [1, 1, 1, 1, 0, 0, 0, 0]], dtype=jnp.int32)

    out = imodel_forward(input_ids, attention_mask, embed_table, W, b)
    out = jax.block_until_ready(out)

    ref = _reference(input_ids, attention_mask, embed_table, W, b)
    assert out.shape == (B, H)
    # Full-f32 path now (the MXU bf16 quantization of the previous version is gone); any
    # residual difference comes only from matmul accumulation order in the precompute.
    assert jnp.allclose(out, ref, atol=1e-3, rtol=1e-2), "mismatch vs pure-JAX reference"

    print("KERNEL_OK")
</pallas_src>

<mosaic_0001>
module attributes {stable_mosaic.version = 11 : i64} {
  func.func @kernel(%arg0: i32, %arg1: memref<16xi32, #tpu.memory_space<smem>>, %arg2: memref<72x128xf32, #tpu.memory_space<vmem>>, %arg3: memref<1x1x128xf32, #tpu.memory_space<vmem>>) attributes {dimension_semantics = [#tpu.dimension_semantics<parallel>], iteration_bounds = array<i64: 2>, scalar_prefetch = 1 : i64, scratch_operands = 0 : i64, tpu.core_type = #tpu.core_type<tc>, window_params = [{pipeline_mode = #tpu.pipeline_mode<synchronous>, transform_indices = @transform_0, window_bounds = array<i64: 72, 128>}, {transform_indices = @transform_1, window_bounds = array<i64: 1, 1, 128>}]} {
    %c8_i32 = arith.constant 8 : i32
    %0 = arith.muli %arg0, %c8_i32 : i32
    %c0_i32 = arith.constant 0 : i32
    %1 = arith.addi %0, %c0_i32 : i32
    %cst = arith.constant 0.000000e+00 : f32
    %2 = vector.broadcast %cst : f32 to vector<1x128xf32>
    %c0_i32_0 = arith.constant 0 : i32
    %3 = arith.addi %1, %c0_i32_0 : i32
    %4 = arith.index_cast %3 : i32 to index
    %5 = memref.load %arg1[%4] : memref<16xi32, #tpu.memory_space<smem>>
    %6 = arith.index_cast %5 : i32 to index
    %c0 = arith.constant 0 : index
    %7 = vector.load %arg2[%6, %c0] : memref<72x128xf32, #tpu.memory_space<vmem>>, vector<1x128xf32>
    %8 = arith.addf %2, %7 : vector<1x128xf32>
    %c1_i32 = arith.constant 1 : i32
    %9 = arith.addi %1, %c1_i32 : i32
    %10 = arith.index_cast %9 : i32 to index
    %11 = memref.load %arg1[%10] : memref<16xi32, #tpu.memory_space<smem>>
    %12 = arith.index_cast %11 : i32 to index
    %c0_1 = arith.constant 0 : index
    %13 = vector.load %arg2[%12, %c0_1] : memref<72x128xf32, #tpu.memory_space<vmem>>, vector<1x128xf32>
    %14 = arith.addf %8, %13 : vector<1x128xf32>
    %c2_i32 = arith.constant 2 : i32
    %15 = arith.addi %1, %c2_i32 : i32
    %16 = arith.index_cast %15 : i32 to index
    %17 = memref.load %arg1[%16] : memref<16xi32, #tpu.memory_space<smem>>
    %18 = arith.index_cast %17 : i32 to index
    %c0_2 = arith.constant 0 : index
    %19 = vector.load %arg2[%18, %c0_2] : memref<72x128xf32, #tpu.memory_space<vmem>>, vector<1x128xf32>
    %20 = arith.addf %14, %19 : vector<1x128xf32>
    %c3_i32 = arith.constant 3 : i32
    %21 = arith.addi %1, %c3_i32 : i32
    %22 = arith.index_cast %21 : i32 to index
    %23 = memref.load %arg1[%22] : memref<16xi32, #tpu.memory_space<smem>>
    %24 = arith.index_cast %23 : i32 to index
    %c0_3 = arith.constant 0 : index
    %25 = vector.load %arg2[%24, %c0_3] : memref<72x128xf32, #tpu.memory_space<vmem>>, vector<1x128xf32>
    %26 = arith.addf %20, %25 : vector<1x128xf32>
    %c4_i32 = arith.constant 4 : i32
    %27 = arith.addi %1, %c4_i32 : i32
    %28 = arith.index_cast %27 : i32 to index
    %29 = memref.load %arg1[%28] : memref<16xi32, #tpu.memory_space<smem>>
    %30 = arith.index_cast %29 : i32 to index
    %c0_4 = arith.constant 0 : index
    %31 = vector.load %arg2[%30, %c0_4] : memref<72x128xf32, #tpu.memory_space<vmem>>, vector<1x128xf32>
    %32 = arith.addf %26, %31 : vector<1x128xf32>
    %c5_i32 = arith.constant 5 : i32
    %33 = arith.addi %1, %c5_i32 : i32
    %34 = arith.index_cast %33 : i32 to index
    %35 = memref.load %arg1[%34] : memref<16xi32, #tpu.memory_space<smem>>
    %36 = arith.index_cast %35 : i32 to index
    %c0_5 = arith.constant 0 : index
    %37 = vector.load %arg2[%36, %c0_5] : memref<72x128xf32, #tpu.memory_space<vmem>>, vector<1x128xf32>
    %38 = arith.addf %32, %37 : vector<1x128xf32>
    %c6_i32 = arith.constant 6 : i32
    %39 = arith.addi %1, %c6_i32 : i32
    %40 = arith.index_cast %39 : i32 to index
    %41 = memref.load %arg1[%40] : memref<16xi32, #tpu.memory_space<smem>>
    %42 = arith.index_cast %41 : i32 to index
    %c0_6 = arith.constant 0 : index
    %43 = vector.load %arg2[%42, %c0_6] : memref<72x128xf32, #tpu.memory_space<vmem>>, vector<1x128xf32>
    %44 = arith.addf %38, %43 : vector<1x128xf32>
    %c7_i32 = arith.constant 7 : i32
    %45 = arith.addi %1, %c7_i32 : i32
    %46 = arith.index_cast %45 : i32 to index
    %47 = memref.load %arg1[%46] : memref<16xi32, #tpu.memory_space<smem>>
    %48 = arith.index_cast %47 : i32 to index
    %c0_7 = arith.constant 0 : index
    %49 = vector.load %arg2[%48, %c0_7] : memref<72x128xf32, #tpu.memory_space<vmem>>, vector<1x128xf32>
    %50 = arith.addf %44, %49 : vector<1x128xf32>
    %c0_8 = arith.constant 0 : index
    %c0_9 = arith.constant 0 : index
    %c0_10 = arith.constant 0 : index
    %51 = vector.load %arg3[%c0_8, %c0_9, %c0_10] : memref<1x1x128xf32, #tpu.memory_space<vmem>>, vector<1x1x128xf32>
    %52 = vector.shape_cast %51 : vector<1x1x128xf32> to vector<1x128xf32>
    %53 = vector.shape_cast %50 : vector<1x128xf32> to vector<1x1x128xf32>
    tpu.vector_store %arg3[%c0_8, %c0_9, %c0_10], %53 {strides = array<i32>} : memref<1x1x128xf32, #tpu.memory_space<vmem>>, vector<1x1x128xf32>,
    return
  }
  func.func @transform_0(%arg0: i32, %arg1: memref<16xi32, #tpu.memory_space<smem>>) -> (i32, i32) {
    %c0_i32 = arith.constant 0 : i32
    %c0_i32_0 = arith.constant 0 : i32
    %c0_i32_1 = arith.constant 0 : i32
    return %c0_i32, %c0_i32_0 : i32, i32
  }
  func.func @transform_1(%arg0: i32, %arg1: memref<16xi32, #tpu.memory_space<smem>>) -> (i32, i32, i32) {
    %c0_i32 = arith.constant 0 : i32
    %c0_i32_0 = arith.constant 0 : i32
    %c0_i32_1 = arith.constant 0 : i32
    return %arg0, %c0_i32, %c0_i32_0 : i32, i32, i32
  }
}

</mosaic_0001>

<bundles_post_ra>
// kernel: tpu_custom_call.1
= control target key start
LH: loop header
LB: loop body
LE: loop exit
PB: predicated region body
PF: predicated region fallthrough
CT: control target
= control target key end

     0   :  { %s564_s0 = inlined_call_operand.hbm [shape: s32[16], index: 0, kind: input, shape index: {}]   ;;  %s565_s1 = inlined_call_operand.hbm [shape: f32[72,128], index: 1, kind: input, shape index: {}]   ;;  %s566_s2 = inlined_call_operand.hbm [shape: f32[2,1,128], index: 2, kind: output, shape index: {}]  }
   0x1   :  { %s293_s11 = scalar_lea.hbm %s564_s0, 16 }
   0x2   :  { %p294_p0 = scmp.ne.s32.totalorder %s564_s0, %s293_s11  ;;  %p297_p1 = scmp.lt.u32.totalorder %s293_s11, %s564_s0 }
   0x4   :  { %p299_p2 = pnand %p297_p1, %p294_p0 }
   0x6   :  { %302 = shalt.err (!%p299_p2)  }
   0x7   :  { %s401_s16 = smov [#allocation3]  }
   0x8   :  { %8 = dma.hbm_to_smem %s564_s0, 16, %s401_s16, [#allocation2] }
   0x9   :  { %375 = dma.done.wait [#allocation2], 16 }
   0xa   :  { %376 = vsyncadd [#allocation2], 4294967280 }
   0xb   :  { %10 = sfence }
   0xc   :  { %11 = vsyncpa [#allocation5], 0 }
   0xd   :  { %12 = vsyncpa [#allocation6], 0 }
   0xe   :  { %14 = vsyncpa [#allocation6 + $0x1], 0  ;;  %s433_s19 = smov 0   ;;  %s435_s20 = smov 0  }
   0xf   :  { %s437_s21 = smov 0   ;;  %s439_s22 = smov 0  }
  0x10 LB: > { %s454_s0 = sadd.s32 4294967295, %s399_s22   ;;  %s231_s23 = sadd.s32 4294967294, %s399_s22   ;;  %s399_s22 = sphi %s439_s22, %s582_s22   ;;  %s395_s21 = sphi %s437_s21, %s581_s21   ;;  %s391_s20 = sphi %s435_s20, %s580_s20   ;;  %s387_s19 = sphi %s433_s19, %s579_s19  }
  0x11   : > { %s458_s24 = sadd.s32 1, %s399_s22   ;;  %s48_s25 = sadd.s32 1, %s395_s21 }
  0x12   : > { %s45_s26 = ssub.s32 %s399_s22, %s458_s24  ;;  %p58_p3 = scmp.ne.s32.totalorder %s395_s21, %s391_s20 }
  0x13   : > { %p46_p4 = scmp.eq.s32.totalorder %s45_s26, 0  ;;  %p59_p5 = scmp.eq.s32.totalorder %s454_s0, 1 }
  0x14   : > { %p64_p6 = scmp.ne.s32.totalorder %s391_s20, %s387_s19  ;;  %p65_p7 = scmp.eq.s32.totalorder %s231_s23, 1 }
  0x15   : > { %s469_s27 = scalar_select %p46_p4, %s395_s21, %s48_s25  }
  0x16   : > { %p471_p8 = por %p59_p5, %p58_p3  ;;  %p475_p9 = por %p65_p7, %p64_p6 }
  0x17   : > { %p232_p10 = scmp.ge.s32.totalorder %s399_s22, 1  ;;  %p72_p11 = scmp.lt.s32.totalorder %s399_s22, 3 }
  0x18   : > { %s570_s28 = scalar_select %p471_p8, 1, 0 }
  0x19   : > { %s571_s29 = scalar_select %p475_p9, 1, 0 }
  0x1a   : > { %p567_p12 = scmp.eq.s32.totalorder %s454_s0, 0  ;;  %p482_p13 = pnand %p232_p10, %p72_p11 }
  0x1b   : > { %s402_s3 = smov [#allocation4]   ;;  %s303_s8 = scalar_lea.hbm %s565_s1, 1152 }
  0x1c   : > { %s572_s30 = scalar_select %p482_p13, 1, 0 }
  0x1d   : > { %s84_s4 = sshll.u32 %s402_s3, 4  ;;  %p246_p0 = pneg %p482_p13  ;;  %s85_s4 = int_to_ptr.vmem [resolvable:$true] %s84_s4 }
  0x1e   : > { %p304_p2 = scmp.ne.s32.totalorder %s565_s1, %s303_s8  ;;  %p310_p6 = scmp.lt.u32.totalorder %s303_s8, %s565_s1 }
  0x1f   : > { %p490_p1 = pnand %p567_p12, %p246_p0 }
  0x21   : > { %p305_p3 = pneg %p490_p1 }
  0x23   : > { %p306_p4 = pnand %p305_p3, %p304_p2 }
  0x25   : > { %p307_p5 = pneg %p306_p4 }
  0x27   : > { %p312_p7 = pnand %p310_p6, %p307_p5 }
  0x29   : > { %315 = shalt.err (!%p312_p7)
}
  0x2a   : > { %s316_s13 = scalar_lea.vmem %s85_s4, 1152  ;;  %p324_p12 = scmp.lt.s32.totalorder %s85_s4, %s85_s4 }
  0x2b   : > { %p317_p10 = scmp.ne.s32.totalorder %s85_s4, %s316_s13  ;;  %p325_p9 = scmp.lt.s32.totalorder %s316_s13, %s316_s13 }
  0x2d   : > { %p319_p11 = pnand %p317_p10, %p305_p3  ;;  %p326_p8 = por %p325_p9, %p324_p12 }
  0x2f   : > { %p320_p0 = pneg %p319_p11 }
  0x31   : > { %p327_p13 = pnand %p326_p8, %p320_p0 }
  0x33   : > { %330 = shalt.err (!%p327_p13)
}
  0x34   : > { %s403_s14 = smov 128   ;;  %s404_s15 = smov 8  }
  0x35   : > { %249 = dma.hbm_to_vmem [thread:$0]  (!%p490_p1), %s565_s1, 1152, %s85_s4, [#allocation5], %s403_s14, %s403_s14, %s404_s15  }
  0x36   : > { %p574_p2 = scmp.ne.s32.totalorder %s572_s30, 0 }
  0x37   : > { %p575_p4 = scmp.eq.s32.totalorder (!%p574_p2), %s454_s0, 0 }
  0x38   : > { %100 = sbr.rel (%p574_p2) target bundleno = 102 (0x66), region = 24 }
  0x3f   : > { %378 = dma.done.wait (%p575_p4), [#allocation5], 1152   ;;  %p576_p3 = pmov %p575_p4 }
  0x40   : > { %s236_s18 = sshll.u32 %s454_s0, 3  ;;  %p577_p9 = scmp.ne.s32.totalorder %s570_s28, 0 }
  0x41   : > { %380 = vsyncadd (%p576_p3), [#allocation5], 4294966144  ;;  %s115_s23 = sld [smem:[#allocation3 + %s236_s18]]  ;;  %s119_s25 = sadd.s32 1, %s236_s18 }
  0x42   : > { %s124_s26 = sadd.s32 2, %s236_s18  ;;  %s120_s3 = sld [smem:[#allocation3 + %s119_s25]] }
  0x43   : > { %s125_s5 = sld [smem:[#allocation3 + %s124_s26]]  ;;  %s129_s6 = sadd.s32 3, %s236_s18 }
  0x44   : > { %s134_s7 = sadd.s32 4, %s236_s18  ;;  %s130_s8 = sld [smem:[#allocation3 + %s129_s6]] }
  0x45   : > { %s135_s4 = sld [smem:[#allocation3 + %s134_s7]]  ;;  %s139_s9 = sadd.s32 5, %s236_s18 }
  0x46   : > { %s144_s30 = sadd.s32 6, %s236_s18  ;;  %s140_s10 = sld [smem:[#allocation3 + %s139_s9]] }
  0x47   : > { %s116_s11 = scalar_lea.vmem [#allocation4], %s115_s23  ;;  %s145_s12 = sld [smem:[#allocation3 + %s144_s30]] }
  0x48   : > { %v117_v0 = vld [vmem:[%s116_s11] sm:$0x1]  ;;  %s149_s13 = sadd.s32 7, %s236_s18  ;;  %s121_s14 = scalar_lea.vmem [#allocation4], %s120_s3 }
  0x49   : > { %v122_v1 = vld [vmem:[%s121_s14] sm:$0x1]  ;;  %s126_s15 = scalar_lea.vmem [#allocation4], %s125_s5  ;;  %s150_s16 = sld [smem:[#allocation3 + %s149_s13]] }
  0x4a   : > { %v127_v2 = vld [vmem:[%s126_s15] sm:$0x1]  ;;  %v123_v3 = vadd.f32 %v122_v1, %v117_v0  ;;  %s131_s17 = scalar_lea.vmem [#allocation4], %s130_s8  ;;  %s112_s25 = sand.u32 1, %s391_s20  }
  0x4b   : > { %v132_v4 = vld [vmem:[%s131_s17] sm:$0x1]  ;;  %s136_s26 = scalar_lea.vmem [#allocation4], %s135_s4  ;;  %s113_s3 = scalar_lea.vmem [#allocation7], %s112_s25 }
  0x4c   : > { %v128_v5 = vadd.f32 %v127_v2, %v123_v3  ;;  %v137_v6 = vld [vmem:[%s136_s26] sm:$0x1]  ;;  %s141_s6 = scalar_lea.vmem [#allocation4], %s140_s10  ;;  %s168_s5 = sshll.u32 %s113_s3, 4  ;;  %s519_s5 = int_to_ptr.vmem [resolvable:$true] %s168_s5 }
  0x4d   : > { %v142_v8 = vld [vmem:[%s141_s6] sm:$0x1]  ;;  %s146_s23 = scalar_lea.vmem [#allocation4], %s145_s12  ;;  %s237_s7 = sshll.u32 %s454_s0, 4 }
  0x4e   : > { %v133_v7 = vadd.f32 %v132_v4, %v128_v5  ;;  %v147_v10 = vld [vmem:[%s146_s23] sm:$0x1]  ;;  %s524_s9 = scalar_lea.hbm %s566_s2, %s237_s7  ;;  %s156_s30 = scalar_lea.sflag [#allocation6], %s112_s25 }
  0x4f   : > { %s151_s18 = scalar_lea.vmem [#allocation4], %s150_s16  ;;  %s331_s10 = scalar_lea.vmem %s519_s5, 16 }
  0x50   : > { %v138_v9 = vadd.f32 %v137_v6, %v133_v7  ;;  %v152_v12 = vld [vmem:[%s151_s18] sm:$0x1]  ;;  %p332_p8 = scmp.ne.s32.totalorder %s519_s5, %s331_s10  ;;  %s405_s0 = smov [#allocation7]  }
  0x51   : > { %s335_s11 = sshll.u32 %s405_s0, 4  ;;  %s336_s11 = int_to_ptr.vmem [resolvable:$false] %s335_s11 }
  0x52   : > { %v143_v11 = vadd.f32 %v142_v8, %v138_v9  ;;  %p333_p12 = pnand %p332_p8, %p577_p9  ;;  %s337_s12 = scalar_lea.vmem %s336_s11, 32 }
  0x53   : > { %p338_p1 = scmp.lt.s32.totalorder %s519_s5, %s336_s11  ;;  %p339_p5 = scmp.lt.s32.totalorder %s337_s12, %s331_s10 }
  0x54   : > { %v148_v13 = vadd.f32 %v147_v10, %v143_v11  ;;  %p334_p13 = pneg %p333_p12 }
  0x55   : > { %p340_p6 = por %p339_p5, %p338_p1 }
  0x56   : > { %v153_v14 = vadd.f32 %v152_v12, %v148_v13 }
  0x57   : > { %p341_p7 = pnand %p340_p6, %p334_p13 }
  0x58   : > { %154 = vst [vmem:[%s113_s3] sm:$0x1] %v153_v14 }
  0x59   : > { %344 = shalt.err (!%p341_p7)
}
  0x5a   : > { %s345_s13 = scalar_lea.hbm %s524_s9, 16  ;;  %s349_s16 = scalar_lea.hbm %s566_s2, 32 }
  0x5b   : > { %p346_p10 = scmp.ne.s32.totalorder %s524_s9, %s345_s13  ;;  %p350_p2 = scmp.lt.u32.totalorder %s524_s9, %s566_s2 }
  0x5c   : > { %p351_p4 = scmp.lt.u32.totalorder %s349_s16, %s345_s13  ;;  %p353_p8 = scmp.lt.u32.totalorder %s345_s13, %s524_s9 }
  0x5d   : > { %p347_p11 = pnand %p346_p10, %p577_p9 }
  0x5e   : > { %p352_p3 = por %p351_p4, %p350_p2 }
  0x5f   : > { %p348_p0 = pneg %p347_p11 }
  0x60   : > { %p354_p12 = por %p353_p8, %p352_p3 }
  0x62   : > { %p355_p13 = pnand %p354_p12, %p348_p0 }
  0x64   : > { %358 = shalt.err (!%p355_p13)
}
  0x65   : > { %244 = dma.vmem_to_hbm [thread:$0]  (%p577_p9), %s519_s5, 16, %s524_s9, %s156_s30  }
  0x66 PF: > { %p256_p1 = scmp.ge.s32.totalorder %s399_s22, 2  ;;  %s180_s26 = sand.u32 1, %s387_s19  }
  0x67   : > { %p578_p5 = scmp.ne.s32.totalorder %s571_s29, 0  ;;  %s181_s6 = scalar_lea.sflag [#allocation6], %s180_s26 }
  0x69   : > { %p251_p6 = pnand %p256_p1, %p578_p5 }
  0x6b   : > { %382 = dma.done.wait (!%p251_p6), %s181_s6, 16  }
  0x6c   : > { %384 = vsyncadd (!%p251_p6), %s181_s6, 4294967280  ;;  %p17_p7 = scmp.ge.s32.totalorder %s458_s24, 4   ;;  %s579_s19 = smov %s391_s20 }
  0x6d   : > { %s580_s20 = smov %s395_s21  ;;  %s581_s21 = smov %s469_s27 }
  0x6e   : > { %s582_s22 = smov %s458_s24  ;;  %19 = sbr.rel (!%p17_p7) target bundleno = 16 (0x10), region = 69 }
  0x75   :  { %185 = vsyncpa [#allocation5], 1 }
  0x76   :  { %187 = vsyncpa [#allocation5 + $0x1], 1 }
  0x77   :  { %188 = vsyncpa [#allocation6], 1 }
  0x78   :  { %190 = vsyncpa [#allocation6 + $0x1], 1 }

</bundles_post_ra>
